<compile_context>
chip_gen: v5e
topology: v5e:2x2
jax: 0.10.0
libtpu: 0.0.40
codegen_flags: <defaults>
</compile_context>

<pallas_src>
import functools

import jax
import jax.numpy as jnp
from jax.experimental import pallas as pl
from jax.experimental.pallas import tpu as pltpu


# --------------------------------------------------------------------------- #
# Fused kernel: tiled linear (x @ W^T + b) with f32 accumulation + RMSNorm
# applied from a per-row-block VMEM slab (single HBM write of the output).
# --------------------------------------------------------------------------- #
def _fused_lm_head_rmsnorm_kernel(x_ref, w_ref, b_ref, o_ref,
                                  acc_ref, slab_ref, ssq_ref,
                                  *, eps, inv_vocab, tn):
    # x_ref:    (tm, tk)        token-row tile, block (i, k)
    # w_ref:    (tn, tk)        weight tile, original (vocab, d_model) layout
    # b_ref:    (1,  tn)        bias tile, block (0, j)
    # o_ref:    (tm, vocab_p)   output block, resident across the (j, k) sweep
    # acc_ref:  (tm, tn)   f32  accumulator for the current column chunk
    # slab_ref: (tm, vocab_p) f32  un-normalized row slab (stays in VMEM)
    # ssq_ref:  (tm, 1)    f32  per-row sum of squares
    j = pl.program_id(1)
    k = pl.program_id(2)
    n_j = pl.num_programs(1)
    n_k = pl.num_programs(2)

    @pl.when((j == 0) & (k == 0))
    def _():
        ssq_ref[...] = jnp.zeros_like(ssq_ref)

    @pl.when(k == 0)
    def _():
        # Fold the bias add into the accumulator init.
        acc_ref[...] = jnp.broadcast_to(
            b_ref[...].astype(jnp.float32), acc_ref.shape)

    # (tm, tk) x (tn, tk) -> (tm, tn): contract last dims, no transpose needed.
    acc_ref[...] += jax.lax.dot_general(
        x_ref[...], w_ref[...],
        dimension_numbers=(((1,), (1,)), ((), ())),
        preferred_element_type=jnp.float32)

    @pl.when(k == n_k - 1)
    def _():
        y = acc_ref[...]
        col = pl.multiple_of(j * tn, tn)
        slab_ref[:, pl.ds(col, tn)] = y
        ssq_ref[...] += jnp.sum(y * y, axis=-1, keepdims=True)

    @pl.when((j == n_j - 1) & (k == n_k - 1))
    def _():
        scale = jax.lax.rsqrt(ssq_ref[...] * inv_vocab + eps)
        o_ref[...] = (slab_ref[...] * scale).astype(o_ref.dtype)


# --------------------------------------------------------------------------- #
# Wrapper
# --------------------------------------------------------------------------- #
def _round_up(x, m):
    return -(-x // m) * m


def _pick_block(dim, preferred, align):
    """Return (block, padded_dim); prefer a padding-free divisor tile."""
    if dim <= preferred:
        return dim, dim                      # full-dim block: always legal
    # Largest multiple of `align` that divides dim and is <= preferred.
    b = (preferred // align) * align
    while b >= align:
        if dim % b == 0:
            return b, dim                    # no padding needed
        b -= align
    blk = max(align, (preferred // align) * align)
    return blk, _round_up(dim, blk)          # last resort: pad


def model_out_layer(x, weight, bias, *, eps=1e-6,
                    tm=256, tn=512, tk=1024,
                    slab_budget_bytes=24 << 20):
    """x: (B, S, d_model). weight: (vocab, d_model). bias: (vocab,)."""
    B, S, d_model = x.shape
    vocab, dk = weight.shape
    assert dk == d_model
    assert bias.shape == (vocab,)
    n_rows = B * S

    out_dtype = x.dtype
    x_item = jnp.dtype(x.dtype).itemsize
    w_item = jnp.dtype(weight.dtype).itemsize

    tn, vocab_p = _pick_block(vocab, tn, 128)     # lane-dense vocab tile
    tk, dk_p = _pick_block(d_model, tk, 128)      # lane-dense K tile

    # Row tile: cap so the f32 slab + double-buffered output block stay within
    # the VMEM budget (v7x has only 64 MiB physical VMEM; v5e/v6e 128 MiB).
    per_row = vocab_p * (4 + 2 * x_item)
    cap = max(8, slab_budget_bytes // per_row)
    tm = int(min(tm, cap))
    if n_rows <= tm:
        tm = max(8, _round_up(n_rows, 8))
    else:
        tm = max(8, (tm // 8) * 8)
    rows_p = _round_up(n_rows, tm)

    x2d = x.reshape(n_rows, d_model)
    if (rows_p, dk_p) != (n_rows, d_model):
        x2d = jnp.pad(x2d, ((0, rows_p - n_rows), (0, dk_p - d_model)))
    w_p = weight
    if (vocab_p, dk_p) != (vocab, d_model):       # rare: only if no divisor tile
        w_p = jnp.pad(weight, ((0, vocab_p - vocab), (0, dk_p - d_model)))
    b_p = bias if vocab_p == vocab else jnp.pad(bias, (0, vocab_p - vocab))
    b_p = b_p.reshape(1, vocab_p)

    n_i, n_j, n_k = rows_p // tm, vocab_p // tn, dk_p // tk

    # Explicit scoped-VMEM limit (v5e default is only 16 MiB), capped below the
    # smallest physical VMEM (v7x: 64 MiB).
    vmem_est = (tm * vocab_p * 4                  # f32 slab scratch
                + 2 * tm * vocab_p * x_item       # output double buffer
                + tm * tn * 4                     # accumulator
                + 2 * tm * tk * x_item            # x tiles
                + 2 * tn * tk * w_item            # weight tiles
                + 2 * tn * w_item                 # bias tiles
                + 4 * tm + (1 << 20))
    vmem_limit = int(min(max(vmem_est * 5 // 4, 32 << 20), 60 << 20))

    kernel = functools.partial(
        _fused_lm_head_rmsnorm_kernel,
        eps=float(eps), inv_vocab=1.0 / vocab, tn=tn)

    out_p = pl.pallas_call(
        kernel,
        out_shape=jax.ShapeDtypeStruct((rows_p, vocab_p), out_dtype),
        grid_spec=pltpu.PrefetchScalarGridSpec(
            num_scalar_prefetch=0,
            grid=(n_i, n_j, n_k),
            in_specs=[
                pl.BlockSpec((tm, tk), lambda i, j, k: (i, k)),   # x rows
                pl.BlockSpec((tn, tk), lambda i, j, k: (j, k)),   # weight
                pl.BlockSpec((1, tn), lambda i, j, k: (0, j)),    # bias
            ],
            out_specs=pl.BlockSpec((tm, vocab_p), lambda i, j, k: (i, 0)),
            scratch_shapes=[
                pltpu.VMEM((tm, tn), jnp.float32),        # acc
                pltpu.VMEM((tm, vocab_p), jnp.float32),   # row slab
                pltpu.VMEM((tm, 1), jnp.float32),         # sum of squares
            ],
        ),
        compiler_params=pltpu.CompilerParams(
            # slab/ssq/output block are revisited across j and k -> arbitrary;
            # rows are independent -> parallel (megacore sharding on v7x).
            dimension_semantics=("parallel", "arbitrary", "arbitrary"),
            vmem_limit_bytes=vmem_limit),
    )(x2d, w_p, b_p)

    if (rows_p, vocab_p) != (n_rows, vocab):
        out_p = out_p[:n_rows, :vocab]
    return out_p.reshape(B, S, vocab)


# --------------------------------------------------------------------------- #
# Reference (pure JAX) and self-test
# --------------------------------------------------------------------------- #
def reference(x, weight, bias, eps=1e-6):
    y = jnp.einsum("bsd,vd->bsv", x, weight,
                   precision=jax.lax.Precision.HIGHEST) + bias
    yf = y.astype(jnp.float32)
    ms = jnp.mean(jnp.square(yf), axis=-1, keepdims=True)
    return (yf * jax.lax.rsqrt(ms + eps)).astype(x.dtype)


if __name__ == "__main__":
    key = jax.random.PRNGKey(0)

    def run_case(k, B, S, d_model, vocab, tol):
        kx, kw, kb = jax.random.split(k, 3)
        bound = 1.0 / (d_model ** 0.5)
        x = jax.random.normal(kx, (B, S, d_model), dtype=jnp.float32)
        w = jax.random.uniform(kw, (vocab, d_model), jnp.float32, -bound, bound)
        b = jax.random.uniform(kb, (vocab,), jnp.float32, -bound, bound)
        out = jax.block_until_ready(model_out_layer(x, w, b))
        ref = reference(x, w, b)
        assert out.shape == (B, S, vocab)
        assert jnp.allclose(out, ref, atol=tol, rtol=tol), \
            float(jnp.max(jnp.abs(out - ref)))

    k1, k2, k3 = jax.random.split(key, 3)

    # Small shapes consistent with the module: batch=2, seq=8, d_model=32, vocab=128.
    # Note: RMSNorm.weight exists in the PyTorch module but is unused in forward.
    run_case(k1, B=2, S=8, d_model=32, vocab=128, tol=1e-4)

    # Tiled path: multiple row / vocab / K blocks, no weight padding needed.
    run_case(k2, B=2, S=300, d_model=2048, vocab=1536, tol=5e-4)

    # Ragged path: vocab not a multiple of 128 -> padded fallback, multi-j.
    run_case(k3, B=1, S=37, d_model=96, vocab=1000, tol=1e-4)

    print("KERNEL_OK")
</pallas_src>

<mosaic_0001>
module attributes {stable_mosaic.version = 11 : i64} {
  func.func @_fused_lm_head_rmsnorm_kernel(%arg0: i32, %arg1: i32, %arg2: i32, %arg3: memref<16x32xf32, #tpu.memory_space<vmem>>, %arg4: memref<128x32xf32, #tpu.memory_space<vmem>>, %arg5: memref<1x128xf32, #tpu.memory_space<vmem>>, %arg6: memref<16x128xf32, #tpu.memory_space<vmem>>, %arg7: memref<16x128xf32, #tpu.memory_space<vmem>>, %arg8: memref<16x128xf32, #tpu.memory_space<vmem>>, %arg9: memref<16x1xf32, #tpu.memory_space<vmem>>) attributes {dimension_semantics = [#tpu.dimension_semantics<parallel>, #tpu.dimension_semantics<arbitrary>, #tpu.dimension_semantics<arbitrary>], iteration_bounds = array<i64: 1, 1, 1>, scalar_prefetch = 0 : i64, scratch_operands = 3 : i64, tpu.core_type = #tpu.core_type<tc>, window_params = [{transform_indices = @transform_0, window_bounds = array<i64: 16, 32>}, {transform_indices = @transform_1, window_bounds = array<i64: 128, 32>}, {transform_indices = @transform_2, window_bounds = array<i64: 1, 128>}, {transform_indices = @transform_3, window_bounds = array<i64: 16, 128>}]} {
    %c0_i32 = arith.constant 0 : i32
    %0 = arith.cmpi eq, %arg1, %c0_i32 : i32
    %c0_i32_0 = arith.constant 0 : i32
    %1 = arith.cmpi eq, %arg2, %c0_i32_0 : i32
    %2 = arith.andi %0, %1 : i1
    %3 = arith.extui %2 : i1 to i32
    %c0_i32_1 = arith.constant 0 : i32
    %4 = arith.cmpi ne, %3, %c0_i32_1 : i32
    scf.if %4 {
      %cst_16 = arith.constant 0.000000e+00 : f32
      %22 = vector.broadcast %cst_16 : f32 to vector<16x1xf32>
      %c0_17 = arith.constant 0 : index
      %c0_18 = arith.constant 0 : index
      %23 = vector.load %arg9[%c0_17, %c0_18] : memref<16x1xf32, #tpu.memory_space<vmem>>, vector<16x1xf32>
      tpu.vector_store %arg9[%c0_17, %c0_18], %22 {strides = array<i32>} : memref<16x1xf32, #tpu.memory_space<vmem>>, vector<16x1xf32>,
    } else {
    }
    %c0_i32_2 = arith.constant 0 : i32
    %5 = arith.cmpi eq, %arg2, %c0_i32_2 : i32
    %6 = arith.extui %5 : i1 to i32
    %c0_i32_3 = arith.constant 0 : i32
    %7 = arith.cmpi ne, %6, %c0_i32_3 : i32
    scf.if %7 {
      %c0_16 = arith.constant 0 : index
      %c0_17 = arith.constant 0 : index
      %22 = vector.load %arg5[%c0_16, %c0_17] : memref<1x128xf32, #tpu.memory_space<vmem>>, vector<1x128xf32>
      %23 = vector.shape_cast %22 : vector<1x128xf32> to vector<1x128xf32>
      %24 = vector.broadcast %23 : vector<1x128xf32> to vector<16x128xf32>
      %c0_18 = arith.constant 0 : index
      %c0_19 = arith.constant 0 : index
      %25 = vector.load %arg7[%c0_18, %c0_19] : memref<16x128xf32, #tpu.memory_space<vmem>>, vector<16x128xf32>
      tpu.vector_store %arg7[%c0_18, %c0_19], %24 {strides = array<i32>} : memref<16x128xf32, #tpu.memory_space<vmem>>, vector<16x128xf32>,
    } else {
    }
    %c0 = arith.constant 0 : index
    %c0_4 = arith.constant 0 : index
    %8 = vector.load %arg7[%c0, %c0_4] : memref<16x128xf32, #tpu.memory_space<vmem>>, vector<16x128xf32>
    %c0_5 = arith.constant 0 : index
    %c0_6 = arith.constant 0 : index
    %9 = vector.load %arg3[%c0_5, %c0_6] : memref<16x32xf32, #tpu.memory_space<vmem>>, vector<16x32xf32>
    %c0_7 = arith.constant 0 : index
    %c0_8 = arith.constant 0 : index
    %10 = vector.load %arg4[%c0_7, %c0_8] : memref<128x32xf32, #tpu.memory_space<vmem>>, vector<128x32xf32>
    %cst = arith.constant dense<0.000000e+00> : vector<16x128xf32>
    %11 = tpu.matmul %9, %10, %cst {dimension_numbers = #tpu.dot_dimension_numbers<[1], [1], [0], [0], [0, 0, 1, 0], [], []>} : vector<16x32xf32>, vector<128x32xf32>, vector<16x128xf32> -> vector<16x128xf32>
    %12 = arith.addf %8, %11 : vector<16x128xf32>
    %c0_9 = arith.constant 0 : index
    %c0_10 = arith.constant 0 : index
    %13 = vector.load %arg7[%c0_9, %c0_10] : memref<16x128xf32, #tpu.memory_space<vmem>>, vector<16x128xf32>
    tpu.vector_store %arg7[%c0_9, %c0_10], %12 {strides = array<i32>} : memref<16x128xf32, #tpu.memory_space<vmem>>, vector<16x128xf32>,
    %c0_i32_11 = arith.constant 0 : i32
    %14 = arith.cmpi eq, %arg2, %c0_i32_11 : i32
    %15 = arith.extui %14 : i1 to i32
    %c0_i32_12 = arith.constant 0 : i32
    %16 = arith.cmpi ne, %15, %c0_i32_12 : i32
    scf.if %16 {
      %c0_16 = arith.constant 0 : index
      %c0_17 = arith.constant 0 : index
      %22 = vector.load %arg7[%c0_16, %c0_17] : memref<16x128xf32, #tpu.memory_space<vmem>>, vector<16x128xf32>
      %c128_i32 = arith.constant 128 : i32
      %23 = arith.muli %arg1, %c128_i32 : i32
      %24 = tpu.assume_multiple %23, 128 : i32
      %c0_18 = arith.constant 0 : index
      %25 = arith.index_cast %24 : i32 to index
      %26 = vector.load %arg8[%c0_18, %25] : memref<16x128xf32, #tpu.memory_space<vmem>>, vector<16x128xf32>
      tpu.vector_store %arg8[%c0_18, %25], %22 {strides = array<i32>} : memref<16x128xf32, #tpu.memory_space<vmem>>, vector<16x128xf32>,
      %c0_19 = arith.constant 0 : index
      %c0_20 = arith.constant 0 : index
      %27 = vector.load %arg9[%c0_19, %c0_20] : memref<16x1xf32, #tpu.memory_space<vmem>>, vector<16x1xf32>
      %28 = arith.mulf %22, %22 : vector<16x128xf32>
      %cst_21 = arith.constant dense<0.000000e+00> : vector<16xf32>
      %29 = vector.multi_reduction <add>, %28, %cst_21 [1] : vector<16x128xf32> to vector<16xf32>
      %30 = vector.shape_cast %29 : vector<16xf32> to vector<16x1xf32>
      %31 = arith.addf %27, %30 : vector<16x1xf32>
      %c0_22 = arith.constant 0 : index
      %c0_23 = arith.constant 0 : index
      %32 = vector.load %arg9[%c0_22, %c0_23] : memref<16x1xf32, #tpu.memory_space<vmem>>, vector<16x1xf32>
      tpu.vector_store %arg9[%c0_22, %c0_23], %31 {strides = array<i32>} : memref<16x1xf32, #tpu.memory_space<vmem>>, vector<16x1xf32>,
    } else {
    }
    %c0_i32_13 = arith.constant 0 : i32
    %17 = arith.cmpi eq, %arg1, %c0_i32_13 : i32
    %c0_i32_14 = arith.constant 0 : i32
    %18 = arith.cmpi eq, %arg2, %c0_i32_14 : i32
    %19 = arith.andi %17, %18 : i1
    %20 = arith.extui %19 : i1 to i32
    %c0_i32_15 = arith.constant 0 : i32
    %21 = arith.cmpi ne, %20, %c0_i32_15 : i32
    scf.if %21 {
      %c0_16 = arith.constant 0 : index
      %c0_17 = arith.constant 0 : index
      %22 = vector.load %arg9[%c0_16, %c0_17] : memref<16x1xf32, #tpu.memory_space<vmem>>, vector<16x1xf32>
      %cst_18 = arith.constant 7.812500e-03 : f32
      %23 = vector.broadcast %cst_18 : f32 to vector<16x1xf32>
      %24 = arith.mulf %22, %23 : vector<16x1xf32>
      %cst_19 = arith.constant 9.99999997E-7 : f32
      %25 = vector.broadcast %cst_19 : f32 to vector<16x1xf32>
      %26 = arith.addf %24, %25 : vector<16x1xf32>
      %27 = math.rsqrt %26 : vector<16x1xf32>
      %c0_20 = arith.constant 0 : index
      %c0_21 = arith.constant 0 : index
      %28 = vector.load %arg8[%c0_20, %c0_21] : memref<16x128xf32, #tpu.memory_space<vmem>>, vector<16x128xf32>
      %29 = vector.broadcast %27 : vector<16x1xf32> to vector<16x128xf32>
      %30 = arith.mulf %28, %29 : vector<16x128xf32>
      %c0_22 = arith.constant 0 : index
      %c0_23 = arith.constant 0 : index
      %31 = vector.load %arg6[%c0_22, %c0_23] : memref<16x128xf32, #tpu.memory_space<vmem>>, vector<16x128xf32>
      tpu.vector_store %arg6[%c0_22, %c0_23], %30 {strides = array<i32>} : memref<16x128xf32, #tpu.memory_space<vmem>>, vector<16x128xf32>,
    } else {
    }
    return
  }
  func.func @transform_0(%arg0: i32, %arg1: i32, %arg2: i32) -> (i32, i32) {
    %c0_i32 = arith.constant 0 : i32
    return %arg0, %arg2 : i32, i32
  }
  func.func @transform_1(%arg0: i32, %arg1: i32, %arg2: i32) -> (i32, i32) {
    %c0_i32 = arith.constant 0 : i32
    return %arg1, %arg2 : i32, i32
  }
  func.func @transform_2(%arg0: i32, %arg1: i32, %arg2: i32) -> (i32, i32) {
    %c0_i32 = arith.constant 0 : i32
    %c0_i32_0 = arith.constant 0 : i32
    return %c0_i32, %arg1 : i32, i32
  }
  func.func @transform_3(%arg0: i32, %arg1: i32, %arg2: i32) -> (i32, i32) {
    %c0_i32 = arith.constant 0 : i32
    %c0_i32_0 = arith.constant 0 : i32
    return %arg0, %c0_i32 : i32, i32
  }
}

</mosaic_0001>

<bundles_post_ra>
// kernel: tpu_custom_call.1
= control target key start
LH: loop header
LB: loop body
LE: loop exit
PB: predicated region body
PF: predicated region fallthrough
CT: control target
= control target key end

     0   :  { %vm53_vm0 = vcmask 261120   ;;  %s413_s0 = inlined_call_operand.vmem [shape: f32[16,32], index: 0, kind: input, shape index: {}]   ;;  %s414_s1 = inlined_call_operand.vmem [shape: f32[128,32], index: 1, kind: input, shape index: {}]   ;;  %s415_s2 = inlined_call_operand.vmem [shape: f32[1,128], index: 2, kind: input, shape index: {}]   ;;  %s416_s3 = inlined_call_operand.hbm [shape: f32[16,128], index: 3, kind: output, shape index: {}]  }
   0x1   :  { %v52_v0 = vld [vmem:[%s414_s1 + $0x78] sm:$0xff]  ;;  %v51_v1 = vld [vmem:[%s414_s1 + $0x70] sm:$0xff] }
   0x2   :  { %222 = vmatpush.xpose.msk.msra.mxu0 %vm53_vm0, %v52_v0  ;;  %240 = vmatpush.xpose.msk.msra.mxu1 %vm53_vm0, %v52_v0 }
   0x3   :  { %8 = vsyncpa [#allocation6], 0  ;;  %v50_v2 = vld [vmem:[%s414_s1 + $0x68] sm:$0xff]  ;;  %v49_v3 = vld [vmem:[%s414_s1 + $0x60] sm:$0xff]  ;;  %vm21_vm1 = vcmask 7168   ;;  %v294_v25 = vmov 0.0  }
   0x4   :  { %v48_v4 = vld [vmem:[%s414_s1 + $0x58] sm:$0xff]  ;;  %v47_v5 = vld [vmem:[%s414_s1 + $0x50] sm:$0xff]  ;;  %v46_v6 = vld [vmem:[%s414_s1 + $0x48] sm:$0xff]  ;;  %22 = vst.msk [vmem:[#allocation4] sm:$0xff] %vm21_vm1, %v294_v25  ;;  %v295_v26 = vmov 0   ;;  %s209_s24 = sshll.u32 %s416_s3, 4  ;;  %s210_s24 = int_to_ptr.hbm [resolvable:$true] %s209_s24 }
   0x5   :  { %v45_v7 = vld [vmem:[%s414_s1 + $0x40] sm:$0xff]  ;;  %v44_v8 = vld [vmem:[%s414_s1 + $0x38] sm:$0xff]  ;;  %v43_v9 = vld [vmem:[%s414_s1 + $0x30] sm:$0xff]  ;;  %23 = vst.msk [vmem:[#allocation4 + $0x8] sm:$0xff] %vm21_vm1, %v294_v25  ;;  %261 = vset.pattern.permute.xlu1 %v295_v26  ;;  %262 = vset.pattern.permute.xlu0 %v295_v26  ;;  %s297_s25 = smov 128   ;;  %s298_s26 = smov 8  }
   0x6   :  { %223 = vmatpush.xpose.msk.msra.mxu0 %vm53_vm0, %v51_v1  ;;  %241 = vmatpush.xpose.msk.msra.mxu1 %vm53_vm0, %v51_v1  ;;  %v42_v10 = vld [vmem:[%s414_s1 + $0x28] sm:$0xff]  ;;  %v41_v11 = vld [vmem:[%s414_s1 + $0x20] sm:$0xff]  ;;  %v40_v12 = vld [vmem:[%s414_s1 + $0x18] sm:$0xff] }
   0x7   :  { %v39_v13 = vld [vmem:[%s414_s1 + $0x10] sm:$0xff]  ;;  %v38_v14 = vld [vmem:[%s414_s1 + $0x8] sm:$0xff]  ;;  %v37_v15 = vld [vmem:[%s414_s1] sm:$0xff] }
   0x8   :  { %v35_v16 = vld [vmem:[%s413_s0] sm:$0xff]  ;;  %v36_v17 = vld [vmem:[%s413_s0 + $0x8] sm:$0xff]  ;;  %s296_s0 = smov [#allocation5]  }
   0x9   :  { %v263_v18 = vld [vmem:[%s415_s2] ss:$0 sm:$0xff]  ;;  %s207_s1 = sshll.u32 %s296_s0, 4  ;;  %s208_s1 = int_to_ptr.vmem [resolvable:$true] %s207_s1 }
   0xa   :  { %224 = vmatpush.xpose.msk.msra.mxu0 %vm53_vm0, %v50_v2  ;;  %242 = vmatpush.xpose.msk.msra.mxu1 %vm53_vm0, %v50_v2 }
   0xb   :  { %v146_v27 = vld [vmem:[#allocation4] sm:$0xff] }
   0xc   :  { %v147_v30 = vld [vmem:[#allocation4 + $0x8] sm:$0xff] }
   0xe   :  { %225 = vmatpush.xpose.msk.msra.mxu0 %vm53_vm0, %v49_v3  ;;  %243 = vmatpush.xpose.msk.msra.mxu1 %vm53_vm0, %v49_v3 }
  0x12   :  { %226 = vmatpush.xpose.msk.msra.mxu0 %vm53_vm0, %v48_v4  ;;  %244 = vmatpush.xpose.msk.msra.mxu1 %vm53_vm0, %v48_v4 }
  0x16   :  { %227 = vmatpush.xpose.msk.msra.mxu0 %vm53_vm0, %v47_v5  ;;  %245 = vmatpush.xpose.msk.msra.mxu1 %vm53_vm0, %v47_v5 }
  0x1a   :  { %228 = vmatpush.xpose.msk.msra.mxu0 %vm53_vm0, %v46_v6  ;;  %246 = vmatpush.xpose.msk.msra.mxu1 %vm53_vm0, %v46_v6 }
  0x1e   :  { %229 = vmatpush.xpose.msk.msra.mxu0 %vm53_vm0, %v45_v7  ;;  %247 = vmatpush.xpose.msk.msra.mxu1 %vm53_vm0, %v45_v7 }
  0x22   :  { %230 = vmatpush.xpose.msk.msra.mxu0 %vm53_vm0, %v44_v8  ;;  %248 = vmatpush.xpose.msk.msra.mxu1 %vm53_vm0, %v44_v8 }
  0x26   :  { %231 = vmatpush.xpose.msk.msra.mxu0 %vm53_vm0, %v43_v9  ;;  %249 = vmatpush.xpose.msk.msra.mxu1 %vm53_vm0, %v43_v9 }
  0x2a   :  { %232 = vmatpush.xpose.msk.msra.mxu0 %vm53_vm0, %v42_v10  ;;  %250 = vmatpush.xpose.msk.msra.mxu1 %vm53_vm0, %v42_v10 }
  0x2e   :  { %233 = vmatpush.xpose.msk.msra.mxu0 %vm53_vm0, %v41_v11  ;;  %251 = vmatpush.xpose.msk.msra.mxu1 %vm53_vm0, %v41_v11 }
  0x32   :  { %234 = vmatpush.xpose.msk.msra.mxu0 %vm53_vm0, %v40_v12  ;;  %252 = vmatpush.xpose.msk.msra.mxu1 %vm53_vm0, %v40_v12 }
  0x36   :  { %235 = vmatpush.xpose.msk.msra.mxu0 %vm53_vm0, %v39_v13  ;;  %253 = vmatpush.xpose.msk.msra.mxu1 %vm53_vm0, %v39_v13 }
  0x3a   :  { %236 = vmatpush.xpose.msk.msra.mxu0 %vm53_vm0, %v38_v14  ;;  %254 = vmatpush.xpose.msk.msra.mxu1 %vm53_vm0, %v38_v14 }
  0x3e   :  { %237 = vmatpush.xpose.msk.msra.mxu0 %vm53_vm0, %v37_v15  ;;  %255 = vmatpush.xpose.msk.msra.mxu1 %vm53_vm0, %v37_v15 }
  0x41   :  { %238 = vmatmul.msk.f32.vlgmr.msra.gmra.mxu0 %vm53_vm0, %v35_v16  ;;  %239 = vmatmul.msk.f32.vlgmr.msra.gmra.mxu1 %vm53_vm0, %v36_v17 }
  0xbe   :  { %v125_v19 = vpop.f32.mrf.mxu0  ;;  %v128_v21 = vpop.f32.mrf.mxu1 }
  0xbf   :  { %v131_v20 = vadd.f32 %v263_v18, %v125_v19  ;;  %v132_v23 = vadd.f32 %v263_v18, %v128_v21 }
  0xc1   :  { %v148_v22 = vmul.f32 %v131_v20, %v131_v20  ;;  %v149_v24 = vmul.f32 %v132_v23, %v132_v23 }
  0xc3   :  { %150 = vadd.xlane.f32.xlu0 %v148_v22 }
  0xcb   :  { %152 = vadd.xlane.f32.xlu0 %v149_v24 }
 0x136   :  { %v151_v28 = vpop.xlane.xlu0 %150 }
 0x137   :  { %v154_v29 = vadd.f32 %v151_v28, %v146_v27 }
 0x139   :  { %157 = vst.msk [vmem:[#allocation4] sm:$0xff] %vm21_vm1, %v154_v29 }
 0x13e   :  { %v153_v31 = vpop.xlane.xlu0 %152 }
 0x13f   :  { %v155_v32 = vadd.f32 %v153_v31, %v147_v30 }
 0x140   :  { %v161_v33 = vld [vmem:[#allocation4] sm:$0xff] }
 0x141   :  { %158 = vst.msk [vmem:[#allocation4 + $0x8] sm:$0xff] %vm21_vm1, %v155_v32  ;;  %v163_v34 = vmul.f32 0.0078125, %v161_v33 }
 0x143   :  { %v165_v35 = vadd.f32 1e-06, %v163_v34 }
 0x145   :  { %264 = vrsqrt.f32 %v165_v35  ;;  %vm173_vm3 = vweird.f32 %v165_v35 }
 0x148   :  { %v162_v36 = vld [vmem:[#allocation4 + $0x8] sm:$0xff] }
 0x149   :  { %v164_v37 = vmul.f32 0.0078125, %v162_v36 }
 0x14b   :  { %v265_v38 = vpop.eup %264  ;;  %v166_v39 = vadd.f32 1e-06, %v164_v37 }
 0x14c   :  { %v168_v40 = vmul.f32 %v265_v38, %v165_v35  ;;  %vm174_vm2 = vweird.f32 %v265_v38 }
 0x14d   :  { %266 = vrsqrt.f32 %v166_v39  ;;  %vm175_vm4 = vmor %vm173_vm3, %vm174_vm2  ;;  %vm183_vm6 = vweird.f32 %v166_v39 }
 0x14e   :  { %v169_v41 = vmul.f32 %v265_v38, %v168_v40 }
 0x150   :  { %v170_v42 = vmul.f32 0.5, %v169_v41 }
 0x152   :  { %v171_v43 = vsub.f32 1.5, %v170_v42 }
 0x153   :  { %v267_v44 = vpop.eup %266 }
 0x154   :  { %v172_v45 = vmul.f32 %v265_v38, %v171_v43  ;;  %v178_v46 = vmul.f32 %v267_v44, %v166_v39  ;;  %vm184_vm5 = vweird.f32 %v267_v44 }
 0x155   :  { %vm185_vm7 = vmor %vm183_vm6, %vm184_vm5 }
 0x156   :  { %v176_v47 = vsel %vm175_vm4, %v265_v38, %v172_v45  ;;  %v179_v48 = vmul.f32 %v267_v44, %v178_v46 }
 0x157   :  { %191 = vperm.xlu1 %261, %v176_v47  }
 0x158   :  { %v180_v49 = vmul.f32 0.5, %v179_v48 }
 0x15a   :  { %v181_v50 = vsub.f32 1.5, %v180_v49 }
 0x15c   :  { %v182_v51 = vmul.f32 %v267_v44, %v181_v50 }
 0x15e   :  { %v186_v52 = vsel %vm185_vm7, %v267_v44, %v182_v51 }
 0x15f   :  { %196 = vperm.xlu1 %261, %v186_v52  }
 0x1c9   :  { %v192_v53 = vpop.permute.xlu1 %191 }
 0x1ca   :  { %v199_v54 = vmul.f32 %v192_v53, %v131_v20 }
 0x1cc   :  { %201 = vst [vmem:[#allocation5] sm:$0xff] %v199_v54 }
 0x1d1   :  { %v197_v55 = vpop.permute.xlu1 %196 }
 0x1d2   :  { %v200_v56 = vmul.f32 %v197_v55, %v132_v23 }
 0x1d4   :  { %202 = vst [vmem:[#allocation5 + $0x8] sm:$0xff] %v200_v56 }
 0x1d5   :  { %215 = dma.vmem_to_hbm [thread:$0]  %s208_s1, 256, %s210_s24, [#allocation6], %s297_s25, %s297_s25, %s298_s26  }
 0x1d6   :  { %292 = dma.done.wait [#allocation6], 256  }
 0x1d7   :  { %293 = vsyncadd [#allocation6], 4294967040 }
 0x1d8   :  { %220 = vsyncpa [#allocation6], 1 }

</bundles_post_ra>
